<compile_context>
chip_gen: v7x
topology: tpu7x:2x2x1
jax: 0.10.0
libtpu: 0.0.40
codegen_flags: <defaults>
</compile_context>

<pallas_src>
import math
from functools import partial

import jax
import jax.numpy as jnp
from jax.experimental import pallas as pl
from jax.experimental.pallas import tpu as pltpu


def _rotary_kernel(pos_ref, inv_ref, out_ref, *, block_positions: int):
    # pos_ref: (t_rows, W) local folded positions  r*fold + c//out_dim  (exact ints, f32)
    # inv_ref: (1, W)      inv_freq duplicated to out_dim, tiled `fold` times
    # out_ref: (t_rows, W) one lane-dense tile of the folded angle table
    base = (pl.program_id(0) * block_positions).astype(jnp.float32)
    # One scalar-add + one broadcast-multiply per vreg; position sum is an
    # exact integer in f32, so the single rounding matches the reference.
    out_ref[...] = (pos_ref[...] + base) * inv_ref[...]


def rotary_embedding(inv_freq: jax.Array, seq_len: int, *,
                     target_block_bytes: int = 2 << 20) -> jax.Array:
    """inv_freq: (rotary_dim//2,) float32 -> (seq_len, 2*len(inv_freq)) float32."""
    half = int(inv_freq.shape[0])
    out_dim = 2 * half
    inv_freq = inv_freq.astype(jnp.float32)

    # Fold consecutive sequence positions into one stored row so the stored
    # last dim W is a multiple of 128 lanes -> unmasked, lane-dense stores.
    fold = math.lcm(out_dim, 128) // out_dim
    w = fold * out_dim

    rows_needed = -(-seq_len // fold)                    # ceil(seq_len / fold)

    # Size the output tile by bytes (~2 MiB default).  t_rows is a multiple of
    # 8 sublanes, or equal to the full row extent when the table is small
    # (block == full array satisfies the (8,128) rule either way).
    bytes_per_row = w * 4
    t_rows = max(8, (target_block_bytes // bytes_per_row) // 8 * 8)
    if t_rows >= rows_needed:
        t_rows = rows_needed
    grid = (pl.cdiv(rows_needed, t_rows),)               # last block may be ragged

    # Per-call constants, computed once in the wrapper (no in-kernel concat,
    # no per-step iota).  Everything below is exact small integers in f32.
    inv_dup = jnp.concatenate([inv_freq, inv_freq])                      # (out_dim,)
    inv_tiled = jnp.tile(inv_dup, fold).reshape(1, w)                    # (1, W)
    row_pos = (jnp.arange(t_rows, dtype=jnp.int32) * fold)[:, None]      # (t_rows, 1)
    col_pos = (jnp.arange(w, dtype=jnp.int32) // out_dim)[None, :]       # (1, W)
    pos_local = (row_pos + col_pos).astype(jnp.float32)                  # (t_rows, W)

    out_folded = pl.pallas_call(
        partial(_rotary_kernel, block_positions=t_rows * fold),
        out_shape=jax.ShapeDtypeStruct((rows_needed, w), jnp.float32),
        grid=grid,
        in_specs=[
            pl.BlockSpec((t_rows, w), lambda i: (0, 0)),   # position table, VMEM-resident
            pl.BlockSpec((1, w), lambda i: (0, 0)),        # inv_freq row, VMEM-resident
        ],
        out_specs=pl.BlockSpec((t_rows, w), lambda i: (i, 0)),
        compiler_params=pltpu.CompilerParams(
            dimension_semantics=("parallel",),
        ),
    )(pos_local, inv_tiled)

    # Row-major (rows, fold*out_dim) == (rows*fold, out_dim).  rows_needed is
    # minimal, so the trailing slice removes at most fold-1 positions and is a
    # no-op whenever seq_len % fold == 0 (no hidden full-table copy).
    table = out_folded.reshape(rows_needed * fold, out_dim)
    if rows_needed * fold != seq_len:
        table = table[:seq_len]
    return table


def make_inv_freq(rotary_dim: int) -> jax.Array:
    # Same deterministic init as the PyTorch module's __init__.
    return 1.0 / (10000.0 ** (jnp.arange(0, rotary_dim, 2, dtype=jnp.float32)
                              / rotary_dim))


def _reference(inv_freq: jax.Array, seq_len: int) -> jax.Array:
    t = jnp.arange(seq_len, dtype=jnp.float32)
    freqs = jnp.einsum("i,j->ij", t, inv_freq)
    return jnp.concatenate([freqs, freqs], axis=-1)


if __name__ == "__main__":
    rotary_dim = 32
    seq_len = 8

    _ = jax.random.PRNGKey(0)  # module has no random parameters; kept for convention

    inv_freq = make_inv_freq(rotary_dim)

    # Small, module-consistent case.
    out = jax.block_until_ready(rotary_embedding(inv_freq, seq_len))
    ref = _reference(inv_freq, seq_len)
    assert out.shape == (seq_len, rotary_dim), out.shape
    assert out.dtype == jnp.float32
    assert jnp.allclose(out, ref, atol=1e-6), "mismatch vs reference"

    # seq_len not divisible by fold -> exercises the (tiny) trailing slice.
    out7 = jax.block_until_ready(rotary_embedding(inv_freq, 7))
    assert out7.shape == (7, rotary_dim)
    assert jnp.allclose(out7, _reference(inv_freq, 7), atol=1e-6)

    # Multi-block grid with a ragged final block (tiny tiles force grid > 1
    # while keeping the data small).
    seq_len_big = 1000
    out_big = jax.block_until_ready(
        rotary_embedding(inv_freq, seq_len_big, target_block_bytes=64 * 1024))
    assert out_big.shape == (seq_len_big, rotary_dim)
    assert jnp.allclose(out_big, _reference(inv_freq, seq_len_big),
                        atol=1e-5, rtol=1e-6), "mismatch vs reference (big)"

    print("KERNEL_OK")
</pallas_src>

<mosaic_0001>
module attributes {stable_mosaic.version = 11 : i64} {
  func.func @_rotary_kernel(%arg0: i32, %arg1: memref<2x128xf32, #tpu.memory_space<vmem>>, %arg2: memref<1x128xf32, #tpu.memory_space<vmem>>, %arg3: memref<2x128xf32, #tpu.memory_space<vmem>>) attributes {dimension_semantics = [#tpu.dimension_semantics<parallel>], iteration_bounds = array<i64: 1>, scalar_prefetch = 0 : i64, scratch_operands = 0 : i64, tpu.core_type = #tpu.core_type<tc>, window_params = [{pipeline_mode = #tpu.pipeline_mode<synchronous>, transform_indices = @transform_0, window_bounds = array<i64: 2, 128>}, {pipeline_mode = #tpu.pipeline_mode<synchronous>, transform_indices = @transform_1, window_bounds = array<i64: 1, 128>}, {transform_indices = @transform_2, window_bounds = array<i64: 2, 128>}]} {
    %c8_i32 = arith.constant 8 : i32
    %0 = arith.muli %arg0, %c8_i32 : i32
    %1 = arith.sitofp %0 : i32 to f32
    %c0 = arith.constant 0 : index
    %c0_0 = arith.constant 0 : index
    %2 = vector.load %arg1[%c0, %c0_0] : memref<2x128xf32, #tpu.memory_space<vmem>>, vector<2x128xf32>
    %3 = vector.broadcast %1 : f32 to vector<2x128xf32>
    %4 = arith.addf %2, %3 : vector<2x128xf32>
    %c0_1 = arith.constant 0 : index
    %c0_2 = arith.constant 0 : index
    %5 = vector.load %arg2[%c0_1, %c0_2] : memref<1x128xf32, #tpu.memory_space<vmem>>, vector<1x128xf32>
    %6 = vector.broadcast %5 : vector<1x128xf32> to vector<2x128xf32>
    %7 = arith.mulf %4, %6 : vector<2x128xf32>
    %c0_3 = arith.constant 0 : index
    %c0_4 = arith.constant 0 : index
    %8 = vector.load %arg3[%c0_3, %c0_4] : memref<2x128xf32, #tpu.memory_space<vmem>>, vector<2x128xf32>
    tpu.vector_store %arg3[%c0_3, %c0_4], %7 {strides = array<i32>} : memref<2x128xf32, #tpu.memory_space<vmem>>, vector<2x128xf32>,
    return
  }
  func.func @transform_0(%arg0: i32) -> (i32, i32) {
    %c0_i32 = arith.constant 0 : i32
    %c0_i32_0 = arith.constant 0 : i32
    %c0_i32_1 = arith.constant 0 : i32
    return %c0_i32, %c0_i32_0 : i32, i32
  }
  func.func @transform_1(%arg0: i32) -> (i32, i32) {
    %c0_i32 = arith.constant 0 : i32
    %c0_i32_0 = arith.constant 0 : i32
    %c0_i32_1 = arith.constant 0 : i32
    return %c0_i32, %c0_i32_0 : i32, i32
  }
  func.func @transform_2(%arg0: i32) -> (i32, i32) {
    %c0_i32 = arith.constant 0 : i32
    %c0_i32_0 = arith.constant 0 : i32
    return %arg0, %c0_i32 : i32, i32
  }
}

</mosaic_0001>

<bundles_post_ra>
// kernel: tpu_custom_call.1
= control target key start
LH: loop header
LB: loop body
LE: loop exit
PB: predicated region body
PF: predicated region fallthrough
CT: control target
= control target key end

     0   :  { %7 = vsyncpa [#allocation3], 0  ;;  %s148_s0 = inlined_call_operand.hbm [shape: f32[2,128], index: 0, kind: input, shape index: {}]   ;;  %s149_s1 = inlined_call_operand.vmem [shape: f32[1,128], index: 1, kind: input, shape index: {}]   ;;  %s150_s2 = inlined_call_operand.hbm [shape: f32[2,128], index: 2, kind: output, shape index: {}]  }
   0x1   :  { %8 = vsyncpa [#allocation4], 0  ;;  %s104_s9 = smov [#allocation2]   ;;  %s56_s13 = scalar_lea.hbm %s148_s0, 32 }
   0x2   :  { %s15_s10 = sshll.u32 %s104_s9, 4  ;;  %p57_p0 = scmp.ne.s32.totalorder %s148_s0, %s56_s13  ;;  %s16_s10 = int_to_ptr.vmem [resolvable:$true] %s15_s10 }
   0x3   :  { %p60_p1 = scmp.lt.u32.totalorder %s56_s13, %s148_s0 }
   0x5   :  { %p62_p2 = pnand %p60_p1, %p57_p0 }
   0x7   :  { %65 = shalt.err (!%p62_p2)
}
   0x8   :  { %s66_s18 = scalar_lea.vmem %s16_s10, 32  ;;  %p71_p4 = scmp.lt.s32.totalorder %s16_s10, %s16_s10 }
   0x9   :  { %p67_p3 = scmp.ne.s32.totalorder %s16_s10, %s66_s18  ;;  %p72_p5 = scmp.lt.s32.totalorder %s66_s18, %s66_s18 }
   0xb   :  { %p73_p6 = por %p72_p5, %p71_p4 }
   0xd   :  { %p74_p7 = pnand %p73_p6, %p67_p3 }
   0xf   :  { %77 = shalt.err (!%p74_p7)
}
  0x10   :  { %18 = dma.hbm_to_vmem [thread:$0]  %s148_s0, 32, %s16_s10, [#allocation3]  }
  0x11   :  { %100 = dma.done.wait [#allocation3], 32  }
  0x12   :  { %101 = vsyncadd [#allocation3], 4294967264  ;;  %s105_s21 = smov [#allocation5]   ;;  %v26_v0 = vld [vmem:[#allocation2] sm:$0x3] }
  0x13   :  { %s44_s22 = sshll.u32 %s105_s21, 4  ;;  %v53_v1 = vld [vmem:[%s149_s1] ss:$0 sm:$0xff]  ;;  %s45_s22 = int_to_ptr.vmem [resolvable:$true] %s44_s22 }
  0x14   :  { %v36_v2 = vmul.f32 %v53_v1, %v26_v0  ;;  %s78_s25 = scalar_lea.vmem %s45_s22, 32  ;;  %p83_p9 = scmp.lt.s32.totalorder %s45_s22, %s45_s22 }
  0x15   :  { %p79_p8 = scmp.ne.s32.totalorder %s45_s22, %s78_s25  ;;  %p84_p10 = scmp.lt.s32.totalorder %s78_s25, %s78_s25 }
  0x16   :  { %37 = vst [vmem:[#allocation5] sm:$0x3] %v36_v2 }
  0x17   :  { %p85_p11 = por %p84_p10, %p83_p9 }
  0x19   :  { %p86_p12 = pnand %p85_p11, %p79_p8 }
  0x1b   :  { %89 = shalt.err (!%p86_p12)
}
  0x1c   :  { %s90_s27 = scalar_lea.hbm %s150_s2, 32 }
  0x1d   :  { %p91_p13 = scmp.ne.s32.totalorder %s150_s2, %s90_s27  ;;  %p94_p0 = scmp.lt.u32.totalorder %s90_s27, %s150_s2 }
  0x1f   :  { %p96_p1 = pnand %p94_p0, %p91_p13 }
  0x21   :  { %99 = shalt.err (!%p96_p1)
}
  0x22   :  { %47 = dma.vmem_to_hbm [thread:$0]  %s45_s22, 32, %s150_s2, [#allocation4]  }
  0x23   :  { %102 = dma.done.wait [#allocation4], 32  }
  0x24   :  { %103 = vsyncadd [#allocation4], 4294967264 }
  0x25   :  { %51 = vsyncpa [#allocation3], 1 }
  0x26   :  { %52 = vsyncpa [#allocation4], 1 }

</bundles_post_ra>
